<compile_context>
chip_gen: v5e
topology: v5e:2x2
jax: 0.10.0
libtpu: 0.0.40
codegen_flags: <defaults>
</compile_context>

<pallas_src>
import jax
import jax.numpy as jnp
from jax.experimental import pallas as pl
from jax.experimental.pallas import tpu as pltpu

LANE = 128
SUBLANE = 8
MAX_BLOCK_ROWS = 8192            # (8192, 128) f32 = 4 MiB per input buffer
NUM_SLICES = 2                   # leading "parallel" axis (2 TCs on v7x; free elsewhere)
VMEM_LIMIT_BYTES = 32 * 1024 * 1024   # 2 inputs x 2 bufs x 4 MiB = 16 MiB + headroom


def _make_kernel(rows_valid, block_rows, blocks_per_slice):
    rows_valid = int(rows_valid)
    block_rows = int(block_rows)
    blocks_per_slice = int(blocks_per_slice)

    def accumulate(acc_ref, sq):
        if block_rows % SUBLANE == 0:
            # Sublane/lane-preserving partial reduce into the (8, 128) acc.
            # TODO(synk): verify in the bundle dump that this reshape lowers to
            # a pure vadd tree (it stays on (8,128) tile boundaries so no VMEM
            # relayout copy is expected).
            acc_ref[...] += sq.reshape(-1, SUBLANE, LANE).sum(axis=0)
        else:
            # Tiny-input fallback (fewer than 8 rows total).
            acc_ref[0:block_rows, :] += sq

    def kernel(yhat_ref, y_ref, out_ref, acc_ref):
        s = pl.program_id(0)          # parallel slice (megacore axis)
        j = pl.program_id(1)          # streaming axis (sequential carry)

        @pl.when(j == 0)
        def _():
            acc_ref[...] = jnp.zeros_like(acc_ref)

        g = s * blocks_per_slice + j              # global block index
        block_start = g * block_rows              # first global row of this block
        is_full = block_start + block_rows <= rows_valid
        is_partial = jnp.logical_and(block_start < rows_valid,
                                     jnp.logical_not(is_full))

        # Steady state: full blocks, no mask math -> loop stays HBM-bound.
        @pl.when(is_full)
        def _():
            d = yhat_ref[...].astype(jnp.float32) - y_ref[...].astype(jnp.float32)
            accumulate(acc_ref, d * d)

        # Boundary block only: mask rows past the valid row count (row-only
        # mask; padded/garbage rows of the Pallas-clipped block contribute 0).
        @pl.when(is_partial)
        def _():
            d = yhat_ref[...].astype(jnp.float32) - y_ref[...].astype(jnp.float32)
            sq = d * d
            row = jax.lax.broadcasted_iota(jnp.int32, (block_rows, LANE), 0)
            valid_rows = rows_valid - block_start
            sq = jnp.where(row < valid_rows, sq, jnp.float32(0.0))
            accumulate(acc_ref, sq)

        # Blocks with block_start >= rows_valid (over-provisioned grid tail)
        # take neither branch and contribute nothing.

        @pl.when(j == pl.num_programs(1) - 1)
        def _():
            out_ref[0, 0] = jnp.sum(acc_ref[...])

    return kernel


def _sum_sq_diff_pallas(yhat2d, y2d, rows_valid, block_rows, num_blocks,
                        num_slices, blocks_per_slice):
    kernel = _make_kernel(rows_valid, block_rows, blocks_per_slice)

    def in_index_map(s, j):
        g = s * blocks_per_slice + j
        # Clamp so over-provisioned grid steps re-read the last valid block;
        # their contribution is gated off inside the kernel.
        return (jnp.minimum(g, num_blocks - 1), 0)

    bytes_accessed = int(
        yhat2d.size * yhat2d.dtype.itemsize
        + y2d.size * y2d.dtype.itemsize
        + num_slices * 4
    )

    partials = pl.pallas_call(
        kernel,
        out_shape=jax.ShapeDtypeStruct((num_slices, 1), jnp.float32),
        grid_spec=pltpu.PrefetchScalarGridSpec(
            num_scalar_prefetch=0,
            grid=(num_slices, blocks_per_slice),
            in_specs=[
                pl.BlockSpec((block_rows, LANE), in_index_map),
                pl.BlockSpec((block_rows, LANE), in_index_map),
            ],
            out_specs=pl.BlockSpec((1, 1), lambda s, j: (s, 0),
                                   memory_space=pltpu.SMEM),
            scratch_shapes=[pltpu.VMEM((SUBLANE, LANE), jnp.float32)],
        ),
        compiler_params=pltpu.CompilerParams(
            dimension_semantics=("parallel", "arbitrary"),
            vmem_limit_bytes=VMEM_LIMIT_BYTES,
        ),
        cost_estimate=pl.CostEstimate(
            flops=3 * int(yhat2d.size),
            transcendentals=0,
            bytes_accessed=bytes_accessed,
        ),
    )(yhat2d, y2d)
    return jnp.sum(partials)


def rmse_loss(yhat, y, eps=1e-6, max_block_rows=MAX_BLOCK_ROWS):
    """loss = sqrt(mean((yhat - y)^2) + eps), matching RMSELoss.forward."""
    assert yhat.shape == y.shape, "yhat and y must have the same shape"

    flat_yhat = yhat.reshape(-1)
    flat_y = y.reshape(-1)
    n = flat_yhat.shape[0]

    rows = n // LANE
    n_main = rows * LANE

    # <128-element lane tail: fold in the wrapper (no full-tensor pad/copy).
    if n_main < n:
        dt = (flat_yhat[n_main:].astype(jnp.float32)
              - flat_y[n_main:].astype(jnp.float32))
        tail_sq = jnp.sum(dt * dt)
    else:
        tail_sq = jnp.float32(0.0)

    if rows > 0:
        yhat2d = flat_yhat[:n_main].reshape(rows, LANE)
        y2d = flat_y[:n_main].reshape(rows, LANE)

        if rows <= SUBLANE:
            block_rows = rows            # block equals full array dims (allowed)
        else:
            cap = max(min(rows, max_block_rows), SUBLANE)
            align = 32 if cap >= 32 else SUBLANE   # keep bf16/int8 sublane-packed
            block_rows = (cap // align) * align

        num_blocks = pl.cdiv(rows, block_rows)
        num_slices = NUM_SLICES if num_blocks >= NUM_SLICES else 1
        blocks_per_slice = pl.cdiv(num_blocks, num_slices)

        main_sq = _sum_sq_diff_pallas(yhat2d, y2d, rows, block_rows, num_blocks,
                                      num_slices, blocks_per_slice)
    else:
        main_sq = jnp.float32(0.0)

    total = main_sq + tail_sq
    mse = total / jnp.float32(n)
    return jnp.sqrt(mse + jnp.float32(eps))


if __name__ == "__main__":
    key = jax.random.PRNGKey(0)
    k1, k2 = jax.random.split(key)

    # Primary check: small NCHW-like regression tensors.
    yhat = jax.random.normal(k1, (2, 4, 16, 16), dtype=jnp.float32)
    y = jax.random.normal(k2, (2, 4, 16, 16), dtype=jnp.float32)
    loss = rmse_loss(yhat, y, eps=1e-6)
    jax.block_until_ready(loss)
    ref = jnp.sqrt(jnp.mean((yhat - y) ** 2) + 1e-6)
    assert jnp.allclose(loss, ref, rtol=1e-5, atol=1e-6), (loss, ref)

    # Path-coverage check: ragged size (lane tail), multiple blocks, two
    # parallel slices, masked partial block and an over-provisioned grid step,
    # forced via a small max_block_rows.
    k3, k4 = jax.random.split(k2)
    yhat2 = jax.random.normal(k3, (5, 11, 40), dtype=jnp.float32)   # 2200 elems
    y2 = jax.random.normal(k4, (5, 11, 40), dtype=jnp.float32)
    loss2 = rmse_loss(yhat2, y2, eps=1e-6, max_block_rows=8)
    jax.block_until_ready(loss2)
    ref2 = jnp.sqrt(jnp.mean((yhat2 - y2) ** 2) + 1e-6)
    assert jnp.allclose(loss2, ref2, rtol=1e-4, atol=1e-6), (loss2, ref2)

    print("KERNEL_OK")
</pallas_src>

<mosaic_0001>
module attributes {stable_mosaic.version = 11 : i64} {
  func.func @kernel(%arg0: i32, %arg1: i32, %arg2: memref<16x128xf32, #tpu.memory_space<vmem>>, %arg3: memref<16x128xf32, #tpu.memory_space<vmem>>, %arg4: memref<1x1xf32, #tpu.memory_space<smem>>, %arg5: memref<8x128xf32, #tpu.memory_space<vmem>>) attributes {dimension_semantics = [#tpu.dimension_semantics<parallel>, #tpu.dimension_semantics<arbitrary>], iteration_bounds = array<i64: 1, 1>, scalar_prefetch = 0 : i64, scratch_operands = 1 : i64, tpu.core_type = #tpu.core_type<tc>, window_params = [{transform_indices = @transform_0, window_bounds = array<i64: 16, 128>}, {transform_indices = @transform_1, window_bounds = array<i64: 16, 128>}, {transform_indices = @transform_2, window_bounds = array<i64: 1, 1>}]} {
    %c0_i32 = arith.constant 0 : i32
    %0 = arith.cmpi eq, %arg1, %c0_i32 : i32
    %1 = arith.extui %0 : i1 to i32
    %c0_i32_0 = arith.constant 0 : i32
    %2 = arith.cmpi ne, %1, %c0_i32_0 : i32
    scf.if %2 {
      %cst = arith.constant 0.000000e+00 : f32
      %18 = vector.broadcast %cst : f32 to vector<8x128xf32>
      %c0 = arith.constant 0 : index
      %c0_8 = arith.constant 0 : index
      %19 = vector.load %arg5[%c0, %c0_8] : memref<8x128xf32, #tpu.memory_space<vmem>>, vector<8x128xf32>
      tpu.vector_store %arg5[%c0, %c0_8], %18 {strides = array<i32>} : memref<8x128xf32, #tpu.memory_space<vmem>>, vector<8x128xf32>,
    } else {
    }
    %c1_i32 = arith.constant 1 : i32
    %3 = arith.muli %arg0, %c1_i32 : i32
    %4 = arith.addi %3, %arg1 : i32
    %c16_i32 = arith.constant 16 : i32
    %5 = arith.muli %4, %c16_i32 : i32
    %c16_i32_1 = arith.constant 16 : i32
    %6 = arith.addi %5, %c16_i32_1 : i32
    %c16_i32_2 = arith.constant 16 : i32
    %7 = arith.cmpi sle, %6, %c16_i32_2 : i32
    %c16_i32_3 = arith.constant 16 : i32
    %8 = arith.cmpi slt, %5, %c16_i32_3 : i32
    %true = arith.constant true
    %9 = arith.xori %7, %true : i1
    %10 = arith.andi %8, %9 : i1
    %11 = arith.extui %7 : i1 to i32
    %c0_i32_4 = arith.constant 0 : i32
    %12 = arith.cmpi ne, %11, %c0_i32_4 : i32
    scf.if %12 {
      %c0 = arith.constant 0 : index
      %c0_8 = arith.constant 0 : index
      %18 = vector.load %arg2[%c0, %c0_8] : memref<16x128xf32, #tpu.memory_space<vmem>>, vector<16x128xf32>
      %c0_9 = arith.constant 0 : index
      %c0_10 = arith.constant 0 : index
      %19 = vector.load %arg3[%c0_9, %c0_10] : memref<16x128xf32, #tpu.memory_space<vmem>>, vector<16x128xf32>
      %20 = arith.subf %18, %19 : vector<16x128xf32>
      %21 = arith.mulf %20, %20 : vector<16x128xf32>
      %c0_11 = arith.constant 0 : index
      %c0_12 = arith.constant 0 : index
      %22 = vector.load %arg5[%c0_11, %c0_12] : memref<8x128xf32, #tpu.memory_space<vmem>>, vector<8x128xf32>
      %23 = vector.shape_cast %21 : vector<16x128xf32> to vector<2x8x128xf32>
      %cst = arith.constant dense<0.000000e+00> : vector<8x128xf32>
      %24 = vector.multi_reduction <add>, %23, %cst [0] : vector<2x8x128xf32> to vector<8x128xf32>
      %25 = arith.addf %22, %24 : vector<8x128xf32>
      %c0_13 = arith.constant 0 : index
      %c0_14 = arith.constant 0 : index
      %26 = vector.load %arg5[%c0_13, %c0_14] : memref<8x128xf32, #tpu.memory_space<vmem>>, vector<8x128xf32>
      tpu.vector_store %arg5[%c0_13, %c0_14], %25 {strides = array<i32>} : memref<8x128xf32, #tpu.memory_space<vmem>>, vector<8x128xf32>,
    } else {
    }
    %13 = arith.extui %10 : i1 to i32
    %c0_i32_5 = arith.constant 0 : i32
    %14 = arith.cmpi ne, %13, %c0_i32_5 : i32
    scf.if %14 {
      %c0 = arith.constant 0 : index
      %c0_8 = arith.constant 0 : index
      %18 = vector.load %arg2[%c0, %c0_8] : memref<16x128xf32, #tpu.memory_space<vmem>>, vector<16x128xf32>
      %c0_9 = arith.constant 0 : index
      %c0_10 = arith.constant 0 : index
      %19 = vector.load %arg3[%c0_9, %c0_10] : memref<16x128xf32, #tpu.memory_space<vmem>>, vector<16x128xf32>
      %20 = arith.subf %18, %19 : vector<16x128xf32>
      %21 = arith.mulf %20, %20 : vector<16x128xf32>
      %22 = tpu.iota {dimensions = array<i32: 0>} : vector<16x128xi32>
      %c16_i32_11 = arith.constant 16 : i32
      %23 = arith.subi %c16_i32_11, %5 : i32
      %24 = vector.broadcast %23 : i32 to vector<16x128xi32>
      %25 = arith.cmpi slt, %22, %24 : vector<16x128xi32>
      %cst = arith.constant 0.000000e+00 : f32
      %26 = vector.broadcast %cst : f32 to vector<16x128xf32>
      %27 = arith.select %25, %21, %26 : vector<16x128xi1>, vector<16x128xf32>
      %c0_12 = arith.constant 0 : index
      %c0_13 = arith.constant 0 : index
      %28 = vector.load %arg5[%c0_12, %c0_13] : memref<8x128xf32, #tpu.memory_space<vmem>>, vector<8x128xf32>
      %29 = vector.shape_cast %27 : vector<16x128xf32> to vector<2x8x128xf32>
      %cst_14 = arith.constant dense<0.000000e+00> : vector<8x128xf32>
      %30 = vector.multi_reduction <add>, %29, %cst_14 [0] : vector<2x8x128xf32> to vector<8x128xf32>
      %31 = arith.addf %28, %30 : vector<8x128xf32>
      %c0_15 = arith.constant 0 : index
      %c0_16 = arith.constant 0 : index
      %32 = vector.load %arg5[%c0_15, %c0_16] : memref<8x128xf32, #tpu.memory_space<vmem>>, vector<8x128xf32>
      tpu.vector_store %arg5[%c0_15, %c0_16], %31 {strides = array<i32>} : memref<8x128xf32, #tpu.memory_space<vmem>>, vector<8x128xf32>,
    } else {
    }
    %c0_i32_6 = arith.constant 0 : i32
    %15 = arith.cmpi eq, %arg1, %c0_i32_6 : i32
    %16 = arith.extui %15 : i1 to i32
    %c0_i32_7 = arith.constant 0 : i32
    %17 = arith.cmpi ne, %16, %c0_i32_7 : i32
    scf.if %17 {
      %c0 = arith.constant 0 : index
      %c0_8 = arith.constant 0 : index
      %18 = vector.load %arg5[%c0, %c0_8] : memref<8x128xf32, #tpu.memory_space<vmem>>, vector<8x128xf32>
      %19 = vector.shape_cast %18 : vector<8x128xf32> to vector<1x8x128xf32>
      %cst = arith.constant dense<0.000000e+00> : vector<1xf32>
      %20 = vector.multi_reduction <add>, %19, %cst [1, 2] : vector<1x8x128xf32> to vector<1xf32>
      %21 = vector.shape_cast %20 : vector<1xf32> to vector<1x1x1xf32>
      %22 = vector.extract %21[0, 0, 0] : f32 from vector<1x1x1xf32>
      %c0_9 = arith.constant 0 : index
      %c0_10 = arith.constant 0 : index
      %23 = memref.load %arg4[%c0_9, %c0_10] : memref<1x1xf32, #tpu.memory_space<smem>>
      memref.store %22, %arg4[%c0_9, %c0_10] : memref<1x1xf32, #tpu.memory_space<smem>>
    } else {
    }
    return
  }
  func.func @transform_0(%arg0: i32, %arg1: i32) -> (i32, i32) {
    %c1_i32 = arith.constant 1 : i32
    %0 = arith.muli %arg0, %c1_i32 : i32
    %1 = arith.addi %0, %arg1 : i32
    %c0_i32 = arith.constant 0 : i32
    %2 = arith.minsi %1, %c0_i32 : i32
    %c0_i32_0 = arith.constant 0 : i32
    %c0_i32_1 = arith.constant 0 : i32
    return %2, %c0_i32_0 : i32, i32
  }
  func.func @transform_1(%arg0: i32, %arg1: i32) -> (i32, i32) {
    %c1_i32 = arith.constant 1 : i32
    %0 = arith.muli %arg0, %c1_i32 : i32
    %1 = arith.addi %0, %arg1 : i32
    %c0_i32 = arith.constant 0 : i32
    %2 = arith.minsi %1, %c0_i32 : i32
    %c0_i32_0 = arith.constant 0 : i32
    %c0_i32_1 = arith.constant 0 : i32
    return %2, %c0_i32_0 : i32, i32
  }
  func.func @transform_2(%arg0: i32, %arg1: i32) -> (i32, i32) {
    %c0_i32 = arith.constant 0 : i32
    %c0_i32_0 = arith.constant 0 : i32
    return %arg0, %c0_i32 : i32, i32
  }
}

</mosaic_0001>

<bundles_post_ra>
// kernel: tpu_custom_call.1
= control target key start
LH: loop header
LB: loop body
LE: loop exit
PB: predicated region body
PF: predicated region fallthrough
CT: control target
= control target key end

     0   :  { %7 = vsyncpa [#allocation4], 0  ;;  %s253_s0 = inlined_call_operand.hbm [shape: f32[16,128], index: 0, kind: input, shape index: {}]   ;;  %s254_s1 = inlined_call_operand.hbm [shape: f32[16,128], index: 1, kind: input, shape index: {}]   ;;  %s255_s2 = inlined_call_operand.hbm [shape: f32[1,1], index: 2, kind: output, shape index: {}]  }
   0x1   :  { %8 = vsyncpa [#allocation7], 0 }
   0x2   :  { %9 = vsyncpa [#allocation5], 0  ;;  %s20_s11 = sshll.u32 %s253_s0, 4  ;;  %s224_s12 = smov [#allocation3]   ;;  %s21_s11 = int_to_ptr.hbm [resolvable:$true] %s20_s11 }
   0x3   :  { %s22_s13 = sshll.u32 %s224_s12, 4  ;;  %s39_s16 = sshll.u32 %s254_s1, 4  ;;  %s23_s13 = int_to_ptr.vmem [resolvable:$true] %s22_s13  ;;  %s40_s16 = int_to_ptr.hbm [resolvable:$true] %s39_s16 }
   0x4   :  { %s225_s17 = smov 128   ;;  %s226_s18 = smov 8  }
   0x5   :  { %28 = dma.hbm_to_vmem [thread:$0]  %s21_s11, 256, %s23_s13, [#allocation4], %s225_s17, %s225_s17, %s226_s18  }
   0x6   :  { %s227_s19 = smov [#allocation6]  }
   0x7   :  { %s41_s20 = sshll.u32 %s227_s19, 4  ;;  %s42_s20 = int_to_ptr.vmem [resolvable:$true] %s41_s20 }
   0x8   :  { %47 = dma.hbm_to_vmem [thread:$0]  %s40_s16, 256, %s42_s20, [#allocation7], %s225_s17, %s225_s17, %s226_s18  }
   0x9   :  { %218 = dma.done.wait [#allocation4], 256  }
   0xa   :  { %219 = vsyncadd [#allocation4], 4294967040 }
   0xb   :  { %220 = dma.done.wait [#allocation7], 256  }
   0xc   :  { %221 = vsyncadd [#allocation7], 4294967040  ;;  %v80_v0 = vld [vmem:[#allocation3] sm:$0xff]  ;;  %v81_v1 = vld [vmem:[#allocation3 + $0x8] sm:$0xff]  ;;  %s135_s21 = sshll.u32 %s255_s2, 4  ;;  %s228_s23 = smov [#allocation8]   ;;  %s136_s21 = int_to_ptr.hbm [resolvable:$true] %s135_s21 }
   0xd   :  { %v82_v2 = vld [vmem:[#allocation6] sm:$0xff]  ;;  %v83_v3 = vld [vmem:[#allocation6 + $0x8] sm:$0xff] }
   0xe   :  { %v84_v4 = vsub.f32 %v80_v0, %v82_v2  ;;  %v85_v5 = vsub.f32 %v81_v1, %v83_v3 }
  0x10   :  { %v86_v6 = vmul.f32 %v84_v4, %v84_v4  ;;  %v87_v7 = vmul.f32 %v85_v5, %v85_v5 }
  0x12   :  { %v89_v8 = vadd.f32 %v87_v7, %v86_v6 }
  0x14   :  { %119 = vadd.xlane.f32.xlu0 %v89_v8 }
  0x87   :  { %v120_v9 = vpop.xlane.xlu0 %119 }
  0x88   :  { %v121_v10 = vrot.slane %v120_v9, 4 }
  0x8a   :  { %v122_v11 = vadd.f32 %v121_v10, %v120_v9 }
  0x8c   :  { %v123_v12 = vrot.slane %v122_v11, 2 }
  0x8e   :  { %v124_v13 = vadd.f32 %v123_v12, %v122_v11 }
  0x90   :  { %v125_v14 = vrot.slane %v124_v13, 1 }
  0x92   :  { %v126_v15 = vadd.f32 %v125_v14, %v124_v13 }
  0x94   :  { %151 = vpush %v126_v15 }
  0xc5   :  { %s152_s22 = spop %151 }
  0xc6   :  { %129 = sst [smem:[#allocation8]] %s152_s22 }
  0xc7   :  { %138 = dma.smem_to_hbm %s228_s23, 16, %s136_s21, [#allocation5]  }
  0xc8   :  { %222 = dma.done.wait [#allocation5], 16  }
  0xc9   :  { %223 = vsyncadd [#allocation5], 4294967280 }
  0xca   :  { %143 = sfence }
  0xcb   :  { %144 = vsyncpa [#allocation4], 1 }
  0xcc   :  { %145 = vsyncpa [#allocation7], 1 }
  0xcd   :  { %146 = vsyncpa [#allocation5], 1 }

</bundles_post_ra>
